<compile_context>
chip_gen: v6e
topology: v6e:2x2x1
jax: 0.10.0
libtpu: 0.0.40
codegen_flags: <defaults>
</compile_context>

<pallas_src>
import jax
import jax.numpy as jnp
from jax.experimental import pallas as pl
from jax.experimental.pallas import tpu as pltpu


def _round_up(a, b):
    return -(-a // b) * b


def _vmem_config():
    """Generation-aware (compiler limit, live-tile budget) in bytes."""
    try:
        cap = int(pltpu.get_tpu_info().vmem_capacity_bytes)
    except Exception:
        cap = 64 << 20  # conservative fallback (v7x per-TC VMEM)
    vmem_limit = min(cap * 3 // 4, 96 << 20)    # v7x: 48 MiB, v5e/v6e: 96 MiB
    tile_budget = min(cap * 3 // 8, 48 << 20)   # v7x: 24 MiB, v5e/v6e: 48 MiB
    return vmem_limit, tile_budget


def _spatial_tile(HW, bytes_per_lane, budget, min_steps):
    """Pick a lane-dense spatial tile and resulting step count.

    Balances steps so they are (an even number of) equal-size tiles whenever
    HW > 128 and min_steps >= 2 (megacore split on v7x), while respecting the
    VMEM live-buffer budget and keeping DMA chunks large.
    """
    if HW <= 128:
        return HW, 1                                  # full-dim block is legal
    hw_pad = _round_up(HW, 128)
    tile_max = (budget // max(bytes_per_lane, 1)) // 128 * 128
    tile_max = int(max(128, min(tile_max, 32768, hw_pad)))
    steps = max(min_steps, pl.cdiv(hw_pad, tile_max))
    if steps > 1 and steps % 2:                       # even, equal-size steps
        steps += 1
    balanced = _round_up(pl.cdiv(hw_pad, steps), 128)
    floor = 512 if hw_pad >= 1024 else 128            # >=2 KiB f32 DMA chunks (v5e)
    tile_hw = int(min(tile_max, max(balanced, floor)))
    n_steps = int(pl.cdiv(HW, tile_hw))
    return tile_hw, n_steps


def _pred_gen_kernel(w_ref, b_ref, x_ref, o_ref):
    # w_ref: (R, K)  VMEM  weights (block index constant across grid)
    # b_ref: (1, 1)  SMEM  bias scalar
    # x_ref: (K, T)  VMEM  input tile (reduction rows, spatial lanes)
    # o_ref: (R, T)  VMEM  output tile (lane-dense)
    acc = jnp.dot(w_ref[...], x_ref[...], preferred_element_type=jnp.float32)
    o_ref[...] = (acc + b_ref[0, 0]).astype(o_ref.dtype)


def prediction_generator(x, weight, bias, *, vmem_tile_budget_bytes=None):
    """Forward pass of Prediction_Generator.

    x:      (N, C, H, W)  (NCHW, same as the PyTorch module)
    weight: (1, C, 1, 1)  Conv2d weight
    bias:   (1,)          Conv2d bias
    returns (x, gt_pre) with gt_pre of shape (N, 1, H, W)
    """
    N, C, H, W = x.shape
    HW = H * W
    NC = N * C
    dtype = x.dtype
    itemsize = jnp.dtype(dtype).itemsize
    sub_q = max(8, 32 // itemsize)        # dtype-aware sublane quantum

    vmem_limit_bytes, auto_budget = _vmem_config()
    budget = auto_budget if vmem_tile_budget_bytes is None else int(vmem_tile_budget_bytes)

    w = weight.reshape(C).astype(dtype)
    b2 = bias.reshape(1, 1).astype(dtype)

    # Block-diagonal trick only where it genuinely saves sublane-padding DMA
    # waste (C < 8) and the dense (N, N*C) LHS stays tiny.
    use_blockdiag = (C < 8) and (_round_up(NC, sub_q) <= 1024)

    if use_blockdiag:
        # ------------- Path A: whole-batch block-diagonal matmul ------------
        x2 = x.reshape(NC, HW)                                # free reshape
        a_mat = jnp.kron(jnp.eye(N, dtype=dtype), w.reshape(1, C))   # (N, N*C)

        # Double-buffered resident weight footprint, excluded from tile budget.
        a_foot = 2 * _round_up(N, sub_q) * _round_up(NC, 128) * itemsize
        in_rows_p = _round_up(NC, sub_q)
        out_rows_p = _round_up(N, sub_q)
        bytes_per_lane = 2 * (in_rows_p + out_rows_p) * itemsize

        tile_hw, n_steps = _spatial_tile(
            HW, bytes_per_lane, max(budget - a_foot, 1 << 20), min_steps=2)

        x_spec_kwargs = {}
        if tile_hw <= 256 and n_steps > 4:        # narrow strided DMAs: go deeper
            x_spec_kwargs = dict(pipeline_mode=pl.Buffered(3))

        cost = pl.CostEstimate(
            flops=2 * N * NC * HW,                # actual dense MXU work
            transcendentals=0,
            bytes_accessed=(NC * HW + N * HW + N * NC + 1) * itemsize,
        )

        out = pl.pallas_call(
            _pred_gen_kernel,
            out_shape=jax.ShapeDtypeStruct((N, HW), dtype),
            grid=(n_steps,),
            in_specs=[
                pl.BlockSpec((N, NC), lambda i: (0, 0)),               # weights
                pl.BlockSpec((1, 1), lambda i: (0, 0),
                             memory_space=pltpu.SMEM),                  # bias
                pl.BlockSpec((NC, tile_hw), lambda i: (0, i),
                             **x_spec_kwargs),                          # x tile
            ],
            out_specs=pl.BlockSpec((N, tile_hw), lambda i: (0, i)),     # lane-dense
            compiler_params=pltpu.CompilerParams(
                dimension_semantics=("parallel",),
                vmem_limit_bytes=vmem_limit_bytes,
            ),
            cost_estimate=cost,
        )(a_mat, b2, x2)

        gt_pre = out.reshape(N, 1, H, W)

    else:
        # ------------- Path B: grid over (batch, spatial) -------------------
        x3 = x.reshape(N, C, HW)                              # free reshape
        w2 = w.reshape(1, C)

        w_foot = 2 * sub_q * _round_up(C, 128) * itemsize
        in_rows_p = _round_up(C, sub_q)
        out_rows_p = sub_q                                    # single padded row
        # Size for the worst case of 3 input buffers (deep-pipelining path).
        bytes_per_lane = (3 * in_rows_p + 2 * out_rows_p) * itemsize

        min_steps = 2 if N == 1 else 1            # N >= 2 already feeds megacore
        tile_hw, n_steps = _spatial_tile(
            HW, bytes_per_lane, max(budget - w_foot, 1 << 20), min_steps=min_steps)

        x_spec_kwargs = {}
        if tile_hw <= 256 and n_steps > 4:
            x_spec_kwargs = dict(pipeline_mode=pl.Buffered(3))

        cost = pl.CostEstimate(
            flops=2 * N * C * HW,
            transcendentals=0,
            bytes_accessed=(NC * HW + N * HW + C + 1) * itemsize,
        )

        out = pl.pallas_call(
            _pred_gen_kernel,
            out_shape=jax.ShapeDtypeStruct((N, 1, HW), dtype),
            grid=(N, n_steps),
            in_specs=[
                pl.BlockSpec((1, C), lambda n, i: (0, 0)),             # weights
                pl.BlockSpec((1, 1), lambda n, i: (0, 0),
                             memory_space=pltpu.SMEM),                  # bias
                pl.BlockSpec((None, C, tile_hw), lambda n, i: (n, 0, i),
                             **x_spec_kwargs),                          # x tile
            ],
            out_specs=pl.BlockSpec((None, 1, tile_hw), lambda n, i: (n, 0, i)),
            compiler_params=pltpu.CompilerParams(
                dimension_semantics=("parallel", "parallel"),
                vmem_limit_bytes=vmem_limit_bytes,
            ),
            cost_estimate=cost,
        )(w2, b2, x3)

        gt_pre = out.reshape(N, 1, H, W)

    return x, gt_pre


if __name__ == "__main__":
    key = jax.random.PRNGKey(0)
    k_x, k_w, k_b = jax.random.split(key, 3)

    N, C, H, W = 2, 4, 16, 16
    x = jax.random.normal(k_x, (N, C, H, W), dtype=jnp.float32)

    # Deterministic parameter init (shapes follow nn.Conv2d(C, 1, kernel_size=1)).
    fan_in = C * 1 * 1
    bound = 1.0 / (fan_in ** 0.5)
    weight = jax.random.uniform(k_w, (1, C, 1, 1), dtype=jnp.float32,
                                minval=-bound, maxval=bound)
    bias = jax.random.uniform(k_b, (1,), dtype=jnp.float32,
                              minval=-bound, maxval=bound)

    x_out, gt_pre = prediction_generator(x, weight, bias)
    jax.block_until_ready(gt_pre)

    # Reference check (plain JAX 1x1 conv).
    ref = (jnp.einsum("nchw,c->nhw", x, weight.reshape(C)) + bias[0])[:, None, :, :]
    assert x_out.shape == (N, C, H, W)
    assert gt_pre.shape == (N, 1, H, W)
    assert jnp.allclose(gt_pre, ref, atol=1e-5, rtol=1e-5), "mismatch vs reference"
    assert jnp.array_equal(x_out, x)

    print("KERNEL_OK")
</pallas_src>

<mosaic_0001>
module attributes {stable_mosaic.version = 11 : i64} {
  func.func @_pred_gen_kernel(%arg0: i32, %arg1: memref<2x8xf32, #tpu.memory_space<vmem>>, %arg2: memref<1x1xf32, #tpu.memory_space<smem>>, %arg3: memref<8x128xf32, #tpu.memory_space<vmem>>, %arg4: memref<2x128xf32, #tpu.memory_space<vmem>>) attributes {dimension_semantics = [#tpu.dimension_semantics<parallel>], iteration_bounds = array<i64: 2>, scalar_prefetch = 0 : i64, scratch_operands = 0 : i64, tpu.core_type = #tpu.core_type<tc>, window_params = [{pipeline_mode = #tpu.pipeline_mode<synchronous>, transform_indices = @transform_0, window_bounds = array<i64: 2, 8>}, {transform_indices = @transform_1, window_bounds = array<i64: 1, 1>}, {transform_indices = @transform_2, window_bounds = array<i64: 8, 128>}, {transform_indices = @transform_3, window_bounds = array<i64: 2, 128>}]} {
    %c0 = arith.constant 0 : index
    %c0_0 = arith.constant 0 : index
    %0 = vector.load %arg1[%c0, %c0_0] : memref<2x8xf32, #tpu.memory_space<vmem>>, vector<2x8xf32>
    %c0_1 = arith.constant 0 : index
    %c0_2 = arith.constant 0 : index
    %1 = vector.load %arg3[%c0_1, %c0_2] : memref<8x128xf32, #tpu.memory_space<vmem>>, vector<8x128xf32>
    %cst = arith.constant dense<0.000000e+00> : vector<2x128xf32>
    %2 = tpu.matmul %0, %1, %cst {dimension_numbers = #tpu.dot_dimension_numbers<[1], [0], [0], [1], [0, 0, 1, 1], [], []>} : vector<2x8xf32>, vector<8x128xf32>, vector<2x128xf32> -> vector<2x128xf32>
    %c0_3 = arith.constant 0 : index
    %c0_4 = arith.constant 0 : index
    %3 = memref.load %arg2[%c0_3, %c0_4] : memref<1x1xf32, #tpu.memory_space<smem>>
    %4 = vector.broadcast %3 : f32 to vector<2x128xf32>
    %5 = arith.addf %2, %4 : vector<2x128xf32>
    %c0_5 = arith.constant 0 : index
    %c0_6 = arith.constant 0 : index
    %6 = vector.load %arg4[%c0_5, %c0_6] : memref<2x128xf32, #tpu.memory_space<vmem>>, vector<2x128xf32>
    tpu.vector_store %arg4[%c0_5, %c0_6], %5 {strides = array<i32>} : memref<2x128xf32, #tpu.memory_space<vmem>>, vector<2x128xf32>,
    return
  }
  func.func @transform_0(%arg0: i32) -> (i32, i32) {
    %c0_i32 = arith.constant 0 : i32
    %c0_i32_0 = arith.constant 0 : i32
    %c0_i32_1 = arith.constant 0 : i32
    return %c0_i32, %c0_i32_0 : i32, i32
  }
  func.func @transform_1(%arg0: i32) -> (i32, i32) {
    %c0_i32 = arith.constant 0 : i32
    %c0_i32_0 = arith.constant 0 : i32
    %c0_i32_1 = arith.constant 0 : i32
    return %c0_i32, %c0_i32_0 : i32, i32
  }
  func.func @transform_2(%arg0: i32) -> (i32, i32) {
    %c0_i32 = arith.constant 0 : i32
    %c0_i32_0 = arith.constant 0 : i32
    return %c0_i32, %arg0 : i32, i32
  }
  func.func @transform_3(%arg0: i32) -> (i32, i32) {
    %c0_i32 = arith.constant 0 : i32
    %c0_i32_0 = arith.constant 0 : i32
    return %c0_i32, %arg0 : i32, i32
  }
}

</mosaic_0001>

<bundles_post_ra>
// kernel: tpu_custom_call.1
= control target key start
LH: loop header
LB: loop body
LE: loop exit
PB: predicated region body
PF: predicated region fallthrough
CT: control target
= control target key end

     0   :  { %s690_s0 = inlined_call_operand.vmem [shape: f32[2,8], index: 0, kind: input, shape index: {}]   ;;  %s691_s1 = inlined_call_operand.<no memory space> [shape: f32[1,1], index: 1, kind: input, shape index: {}]   ;;  %s692_s2 = inlined_call_operand.hbm [shape: f32[8,256], index: 2, kind: input, shape index: {}]   ;;  %s693_s3 = inlined_call_operand.hbm [shape: f32[2,256], index: 3, kind: output, shape index: {}]  }
   0x1   :  { %8 = sst [smem:[#allocation2]] %s691_s1 }
   0x2   :  { %9 = vsyncpa [#allocation4], 0 }
   0x3   :  { %11 = vsyncpa [#allocation4 + $0x1], 0 }
   0x4   :  { %12 = vsyncpa [#allocation5], 0 }
   0x5   :  { %14 = vsyncpa [#allocation5 + $0x1], 0  ;;  %s539_s14 = smov 0   ;;  %s541_s15 = smov 0  }
   0x6   :  { %s543_s16 = smov 0   ;;  %s545_s17 = smov 0  }
   0x7 LB: > { %s560_s1 = sadd.s32 4294967295, %s510_s17   ;;  %s350_s18 = sadd.s32 4294967294, %s510_s17   ;;  %s510_s17 = sphi %s545_s17, %s710_s17   ;;  %s506_s16 = sphi %s543_s16, %s709_s16   ;;  %s502_s15 = sphi %s541_s15, %s708_s15   ;;  %s498_s14 = sphi %s539_s14, %s707_s14  }
   0x8   : > { %s564_s19 = sadd.s32 1, %s510_s17   ;;  %s69_s20 = sadd.s32 1, %s506_s16 }
   0x9   : > { %s66_s21 = ssub.s32 %s510_s17, %s564_s19  ;;  %p76_p0 = scmp.ne.s32.totalorder %s506_s16, %s502_s15 }
   0xa   : > { %p67_p1 = scmp.eq.s32.totalorder %s66_s21, 0  ;;  %p77_p2 = scmp.eq.s32.totalorder %s510_s17, 0 }
   0xb   : > { %p82_p3 = scmp.ne.s32.totalorder %s502_s15, %s498_s14  ;;  %p83_p4 = scmp.eq.s32.totalorder %s560_s1, 0 }
   0xc   : > { %s576_s22 = scalar_select %p67_p1, %s506_s16, %s69_s20  }
   0xd   : > { %p578_p5 = por %p77_p2, %p76_p0  ;;  %p582_p6 = por %p83_p4, %p82_p3 }
   0xe   : > { %p106_p7 = scmp.eq.s32.totalorder %s560_s1, 1  ;;  %p112_p8 = scmp.eq.s32.totalorder %s350_s18, 1 }
   0xf   : > { %s697_s24 = scalar_select %p582_p6, 1, 0 }
  0x10   : > { %p382_p10 = scmp.lt.s32.totalorder %s510_s17, 2  ;;  %p589_p11 = por %p106_p7, %p76_p0 }
  0x11   : > { %p593_p12 = por %p112_p8, %p82_p3  ;;  %s138_s27 = sand.u32 1, %s506_s16  }
  0x12   : > { %s698_s25 = scalar_select %p589_p11, 1, 0 }
  0x13   : > { %s699_s26 = scalar_select %p593_p12, 1, 0 }
  0x14   : > { %s354_s28 = sshll.u32 %s510_s17, 7  ;;  %s353_s29 = sshll.u32 %s138_s27, 3 }
  0x15   : > { %s602_s5 = scalar_lea.hbm %s692_s2, %s354_s28  ;;  %s142_s6 = scalar_lea.vmem [#allocation3], %s353_s29 }
  0x16   : > { %s149_s7 = sshll.u32 %s142_s6, 4  ;;  %p606_p13 = pnand %p382_p10, %p578_p5  ;;  %s610_s7 = int_to_ptr.vmem [resolvable:$true] %s149_s7 }
  0x17   : > { %s139_s9 = scalar_lea.sflag [#allocation4], %s138_s27  ;;  %s418_s10 = scalar_lea.hbm %s602_s5, 128 }
  0x18   : > { %p419_p2 = scmp.ne.s32.totalorder %s602_s5, %s418_s10  ;;  %p420_p3 = pneg %p606_p13 }
  0x19   : > { %s423_s13 = scalar_lea.hbm %s692_s2, 256  ;;  %p424_p5 = scmp.lt.s32.totalorder %s602_s5, %s692_s2 }
  0x1a   : > { %p421_p4 = pnand %p420_p3, %p419_p2  ;;  %p425_p8 = scmp.lt.s32.totalorder %s423_s13, %s418_s10 }
  0x1c   : > { %p422_p7 = pneg %p421_p4  ;;  %p426_p10 = por %p425_p8, %p424_p5 }
  0x1e   : > { %p427_p9 = pnand %p426_p10, %p422_p7 }
  0x20   : > { %430 = shalt.err (!%p427_p9)
}
  0x21   : > { %s431_s21 = scalar_lea.vmem %s610_s7, 128  ;;  %s512_s23 = smov [#allocation3]  }
  0x22   : > { %p432_p0 = scmp.ne.s32.totalorder %s610_s7, %s431_s21  ;;  %s436_s27 = sshll.u32 %s512_s23, 4  ;;  %s437_s27 = int_to_ptr.vmem [resolvable:$false] %s436_s27 }
  0x23   : > { %s438_s28 = scalar_lea.vmem %s437_s27, 256  ;;  %p439_p4 = scmp.lt.s32.totalorder %s610_s7, %s437_s27 }
  0x24   : > { %p434_p1 = pnand %p432_p0, %p420_p3  ;;  %p440_p12 = scmp.lt.s32.totalorder %s438_s28, %s431_s21 }
  0x26   : > { %p435_p2 = pneg %p434_p1  ;;  %p441_p11 = por %p440_p12, %p439_p4 }
  0x28   : > { %p442_p6 = pnand %p441_p11, %p435_p2 }
  0x2a   : > { %445 = shalt.err (!%p442_p6)
}
  0x2b   : > { %377 = dma.hbm_to_vmem [thread:$0]  (!%p606_p13), %s602_s5, 128, %s610_s7, %s139_s9  }
  0x2c   : > { %p701_p9 = scmp.lt.s32.totalorder %s510_s17, 3  ;;  %p702_p7 = scmp.ge.s32.totalorder %s510_s17, 1 }
  0x2e   : > { %p155_p0 = pnand %p702_p7, %p701_p9 }
  0x2f   : > { %s637_s29 = sand.u32 (!%p155_p0), 1, %s502_s15   ;;  %p703_p6 = scmp.ne.s32.totalorder (!%p155_p0), %s697_s24, 0 }
  0x30   : > { %158 = sbr.rel (%p155_p0) target bundleno = 265 (0x109), region = 32  ;;  %s356_s30 = sshll.u32 (!%p155_p0), %s637_s29, 3 }
  0x31   : > { %s161_s4 = scalar_lea.sflag (!%p155_p0), [#allocation4], %s637_s29  ;;  %s164_s6 = scalar_lea.vmem (!%p155_p0), [#allocation3], %s356_s30 }
  0x35   : > { %489 = dma.done.wait (%p703_p6), %s161_s4, 128  }
  0x36   : > { %491 = vsyncadd (%p703_p6), %s161_s4, 4294967168  ;;  %v513_v0 = vmov 0.0   ;;  %vm514_vm0 = vmmov 0   ;;  %vm191_vm1 = vcmask 64512   ;;  %v188_v1 = vld [vmem:[%s164_s6] sm:$0xff]  ;;  %s189_s8 = sld [smem:[#allocation2]] }
  0x37   : > { %365 = vmatprep.subr.mxu0 %v513_v0  ;;  %367 = vmatprep.mubr.msk.f32.mxu0 %vm514_vm0, %v513_v0  ;;  %v187_v2 = vld [vmem:[%s690_s0] sm:$0x3]  ;;  %s357_s9 = sshll.u32 %s637_s29, 1  ;;  %s360_s24 = sshll.u32 %s560_s1, 5 }
  0x38   : > { %366 = vmatpush3.msra.mxu0 %v188_v1  ;;  %s186_s10 = scalar_lea.vmem [#allocation6], %s357_s9  ;;  %s653_s18 = scalar_lea.hbm %s693_s3, %s360_s24 }
  0x39   : > { %368 = vmatmul.mubr.msk.f32.vlgmr.msra.gmra.mxu0 %vm191_vm1, %v187_v2  ;;  %s280_s11 = sshll.u32 %s186_s10, 4  ;;  %s267_s20 = scalar_lea.sflag [#allocation5], %s637_s29  ;;  %s281_s11 = int_to_ptr.vmem [resolvable:$true] %s280_s11 }
  0x3a   : > { %s446_s21 = scalar_lea.vmem %s281_s11, 32  ;;  %p704_p12 = scmp.ne.s32.totalorder %s698_s25, 0 }
  0x3b   : > { %p447_p11 = scmp.ne.s32.totalorder %s281_s11, %s446_s21  ;;  %s515_s23 = smov [#allocation6]  }
  0x3c   : > { %v190_v3 = vstv %s189_s8  ;;  %s450_s1 = sshll.u32 %s515_s23, 4  ;;  %s451_s1 = int_to_ptr.vmem [resolvable:$false] %s450_s1 }
  0x3d   : > { %p448_p13 = pnand %p447_p11, %p704_p12  ;;  %s452_s27 = scalar_lea.vmem %s451_s1, 64 }
  0x3e   : > { %p453_p3 = scmp.lt.s32.totalorder %s281_s11, %s451_s1  ;;  %p454_p5 = scmp.lt.s32.totalorder %s452_s27, %s446_s21 }
  0x3f   : > { %p449_p1 = pneg %p448_p13 }
  0x40   : > { %p455_p8 = por %p454_p5, %p453_p3 }
  0x42   : > { %p456_p10 = pnand %p455_p8, %p449_p1 }
  0xf9   : > { %v261_v4 = vpop.f32.mrf.mxu0 }
  0xfa   : > { %v262_v5 = vadd.f32 %v261_v4, %v190_v3 }
  0xfb   : > { %v369_v6 = vpop.f32.mrf.mxu0 }
  0xfc   : > { %265 = vst [vmem:[%s186_s10] sm:$0x3] %v262_v5 }
  0xfd   : > { %459 = shalt.err (!%p456_p10)
}
  0xfe   : > { %s460_s28 = scalar_lea.hbm %s653_s18, 32  ;;  %s464_s4 = scalar_lea.hbm %s693_s3, 64 }
  0xff   : > { %p461_p2 = scmp.ne.s32.totalorder %s653_s18, %s460_s28  ;;  %p465_p7 = scmp.lt.s32.totalorder %s653_s18, %s693_s3 }
 0x100   : > { %p466_p0 = scmp.lt.s32.totalorder %s464_s4, %s460_s28 }
 0x101   : > { %p462_p4 = pnand %p461_p2, %p704_p12 }
 0x102   : > { %p467_p6 = por %p466_p0, %p465_p7 }
 0x103   : > { %p463_p9 = pneg %p462_p4 }
 0x105   : > { %p468_p11 = pnand %p467_p6, %p463_p9 }
 0x107   : > { %471 = shalt.err (!%p468_p11)
}
 0x108   : > { %372 = dma.vmem_to_hbm [thread:$0]  (%p704_p12), %s281_s11, 32, %s653_s18, %s267_s20  }
 0x109 PF: > { %s292_s7 = sand.u32 1, %s498_s14   ;;  %p705_p13 = scmp.ne.s32.totalorder %s699_s26, 0 }
 0x10a   : > { %p706_p1 = scmp.ge.s32.totalorder %s510_s17, 2  ;;  %s293_s8 = scalar_lea.sflag [#allocation5], %s292_s7 }
 0x10c   : > { %p379_p3 = pnand %p706_p1, %p705_p13 }
 0x10e   : > { %p380_p5 = pneg %p379_p3 }
 0x110   : > { %493 = dma.done.wait (%p380_p5), %s293_s8, 32  }
 0x111   : > { %495 = vsyncadd (%p380_p5), %s293_s8, 4294967264  ;;  %p17_p8 = scmp.ge.s32.totalorder %s564_s19, 4   ;;  %s707_s14 = smov %s502_s15 }
 0x112   : > { %s708_s15 = smov %s506_s16  ;;  %s709_s16 = smov %s576_s22 }
 0x113   : > { %s710_s17 = smov %s564_s19  ;;  %19 = sbr.rel (!%p17_p8) target bundleno = 7 (0x7), region = 77 }
 0x118   :  { %298 = vsyncpa [#allocation4], 1 }
 0x119   :  { %300 = vsyncpa [#allocation4 + $0x1], 1 }
 0x11a   :  { %301 = vsyncpa [#allocation5], 1 }
 0x11b   :  { %303 = vsyncpa [#allocation5 + $0x1], 1 }

</bundles_post_ra>
